<compile_context>
chip_gen: v7x
topology: tpu7x:2x2x1
jax: 0.10.0
libtpu: 0.0.40
codegen_flags: <defaults>
</compile_context>

<pallas_src>
import functools

import jax
import jax.numpy as jnp
from jax import lax
from jax.experimental import pallas as pl
from jax.experimental.pallas import tpu as pltpu

_LANES = 128
_SUBLANES = 8
_MAX_TILE_ROWS = 1024  # 4 inputs x 2 buffers x 1024x128x4B = 4 MiB VMEM


def _loss_range_kernel(rv_ref, tgt_ref, fg_ref, bg_ref, out_ref, *,
                       tile, rows, w, need_mask):
    """One (tile, 128) slab: mask, abs-diff, weighted fold into (8, 128).

    out_ref is a (1, 8, 128) block resident across the sequential grid axis
    (same block index every step of axis 1), i.e. a per-core accumulator of
      sum( (|bg| + w*|fg|) * |masked - tgt| )  partial sums.
    """
    c = pl.program_id(0)   # core / shard index ("parallel")
    i = pl.program_id(1)   # sequential step   ("arbitrary")

    @pl.when(i == 0)
    def _():
        out_ref[...] = jnp.zeros(out_ref.shape, out_ref.dtype)

    rv = rv_ref[...]
    tgt = tgt_ref[...]
    # gt_masked_output[target == -1.0] = -1.0
    masked = jnp.where(tgt == jnp.float32(-1.0), jnp.float32(-1.0), rv)
    # |m*a - m*b| == |m| * |a - b|  (holds for any real mask), so the two L1
    # terms fuse into a single weighted element-wise sum (w >= 0, static).
    d = jnp.abs(masked - tgt)
    wmask = jnp.abs(bg_ref[...]) + jnp.float32(w) * jnp.abs(fg_ref[...])
    contrib = wmask * d

    if need_mask:
        # Ragged last block / phantom blocks from the core split: zero out
        # rows whose global row index is >= the true row count.  Mask the
        # final products so NaN/Inf garbage from OOB rows cannot leak through.
        block_id = c * pl.num_programs(1) + i
        row0 = block_id * tile
        local = lax.broadcasted_iota(jnp.int32, (tile, 1), 0)
        valid = (row0 + local) < rows
        contrib = jnp.where(valid, contrib, jnp.float32(0.0))

    # Fold (tile, 128) -> (8, 128) using only VPU adds (no cross-lane work).
    out_ref[0] += contrib.reshape(tile // _SUBLANES, _SUBLANES, _LANES).sum(axis=0)


def _to_lane_slab(x, rows):
    """Flatten row-major -> (rows, 128) f32; pads (copies) only when needed."""
    flat = x.reshape(-1)
    if flat.dtype != jnp.float32:
        flat = flat.astype(jnp.float32)
    pad = rows * _LANES - flat.shape[0]
    if pad:  # only when numel is not a multiple of 8*128
        flat = jnp.pad(flat, (0, pad))
    return flat.reshape(rows, _LANES)


@functools.partial(jax.jit, static_argnames=("w",))
def loss_range_pallas(rv, target_range_image, foreground_mask, background_mask,
                      epoch_number=None, w=2.0):
    del epoch_number  # unused (kept for parity with the PyTorch signature)
    assert w >= 0.0, "fused-accumulator formulation assumes a nonnegative w"
    n = rv.size  # true element count for the 'mean' reduction

    # rows is a multiple of 8 so block rows are always sublane-aligned and the
    # in-kernel (tile//8, 8, 128) fold is valid.
    rows = pl.cdiv(n, _SUBLANES * _LANES) * _SUBLANES

    rv2 = _to_lane_slab(rv, rows)
    tg2 = _to_lane_slab(target_range_image, rows)
    fg2 = _to_lane_slab(foreground_mask, rows)
    bg2 = _to_lane_slab(background_mask, rows)

    tile = rows if rows <= _MAX_TILE_ROWS else _MAX_TILE_ROWS
    nblocks = pl.cdiv(rows, tile)
    # v7x has 2 TensorCores: split row-blocks across them ("parallel" axis).
    # On single-core v5e/v6e this axis just runs sequentially (no-op).
    ncores = 2 if nblocks >= 2 else 1
    steps = pl.cdiv(nblocks, ncores)
    need_mask = (ncores * steps * tile) != rows

    def in_map(c, i):
        # Clamp so phantom blocks (from an uneven core split) issue in-bounds
        # DMAs; their contribution is zeroed by the in-kernel row mask.
        return (jnp.minimum(c * steps + i, nblocks - 1), 0)

    in_spec = pl.BlockSpec((tile, _LANES), in_map)

    partials = pl.pallas_call(
        functools.partial(_loss_range_kernel, tile=tile, rows=rows,
                          w=float(w), need_mask=need_mask),
        out_shape=jax.ShapeDtypeStruct((ncores, _SUBLANES, _LANES),
                                       jnp.float32),
        grid=(ncores, steps),
        in_specs=[in_spec, in_spec, in_spec, in_spec],
        out_specs=pl.BlockSpec((1, _SUBLANES, _LANES),
                               lambda c, i: (c, 0, 0)),
        compiler_params=pltpu.CompilerParams(
            dimension_semantics=("parallel", "arbitrary")),
    )(rv2, tg2, fg2, bg2)

    # Single tiny cross-lane reduce outside the kernel.
    return jnp.sum(partials) * jnp.float32(1.0 / n)


def _loss_range_ref(rv, tgt, fg, bg, w=2.0):
    masked = jnp.where(tgt == -1.0, -1.0, rv)
    l_bg = jnp.mean(jnp.abs(bg * masked - bg * tgt))
    l_fg = jnp.mean(jnp.abs(fg * masked - fg * tgt))
    return l_bg + w * l_fg


def _make_inputs(key, shape):
    k1, k2, k3, k4 = jax.random.split(key, 4)
    rv = jax.random.uniform(k1, shape, jnp.float32, 0.0, 50.0)
    # target range image: mostly valid ranges, ~20% invalid (== -1.0)
    target = jax.random.uniform(k2, shape, jnp.float32, 0.0, 50.0)
    invalid = jax.random.uniform(k3, shape) < 0.2
    target = jnp.where(invalid, jnp.float32(-1.0), target)
    # foreground / background binary masks
    fg = (jax.random.uniform(k4, shape) < 0.3).astype(jnp.float32)
    bg = 1.0 - fg
    return rv, target, fg, bg


if __name__ == "__main__":
    key = jax.random.PRNGKey(0)
    k_small, k_ragged, k_big = jax.random.split(key, 3)

    # Small NCHW range image (single-block path, numel multiple of 8*128).
    rv, target, fg, bg = _make_inputs(k_small, (2, 4, 16, 16))
    out = loss_range_pallas(rv, target, fg, bg)
    jax.block_until_ready(out)
    ref = _loss_range_ref(rv, target, fg, bg)
    assert jnp.allclose(out, ref, rtol=1e-5, atol=1e-4), (out, ref)

    # Odd-sized image exercising the flatten + pad path.
    rv, target, fg, bg = _make_inputs(k_ragged, (2, 3, 13, 17))
    out = loss_range_pallas(rv, target, fg, bg)
    jax.block_until_ready(out)
    ref = _loss_range_ref(rv, target, fg, bg)
    assert jnp.allclose(out, ref, rtol=1e-5, atol=1e-4), (out, ref)

    # Larger image exercising the tiled + dual-core + ragged-tail path.
    rv, target, fg, bg = _make_inputs(k_big, (2, 2, 64, 600))
    out = loss_range_pallas(rv, target, fg, bg)
    jax.block_until_ready(out)
    ref = _loss_range_ref(rv, target, fg, bg)
    assert jnp.allclose(out, ref, rtol=1e-5, atol=1e-4), (out, ref)

    print("KERNEL_OK")
</pallas_src>

<mosaic_0001>
module attributes {stable_mosaic.version = 11 : i64} {
  func.func @_loss_range_kernel(%arg0: i32, %arg1: i32, %arg2: memref<16x128xf32, #tpu.memory_space<vmem>>, %arg3: memref<16x128xf32, #tpu.memory_space<vmem>>, %arg4: memref<16x128xf32, #tpu.memory_space<vmem>>, %arg5: memref<16x128xf32, #tpu.memory_space<vmem>>, %arg6: memref<1x8x128xf32, #tpu.memory_space<vmem>>) attributes {dimension_semantics = [#tpu.dimension_semantics<parallel>, #tpu.dimension_semantics<arbitrary>], iteration_bounds = array<i64: 1, 1>, scalar_prefetch = 0 : i64, scratch_operands = 0 : i64, tpu.core_type = #tpu.core_type<tc>, window_params = [{transform_indices = @transform_0, window_bounds = array<i64: 16, 128>}, {transform_indices = @transform_1, window_bounds = array<i64: 16, 128>}, {transform_indices = @transform_2, window_bounds = array<i64: 16, 128>}, {transform_indices = @transform_3, window_bounds = array<i64: 16, 128>}, {transform_indices = @transform_4, window_bounds = array<i64: 1, 8, 128>}]} {
    %c0_i32 = arith.constant 0 : i32
    %0 = arith.cmpi eq, %arg1, %c0_i32 : i32
    %1 = arith.extui %0 : i1 to i32
    %c0_i32_0 = arith.constant 0 : i32
    %2 = arith.cmpi ne, %1, %c0_i32_0 : i32
    scf.if %2 {
      %cst_17 = arith.constant 0.000000e+00 : f32
      %27 = vector.broadcast %cst_17 : f32 to vector<1x8x128xf32>
      %c0_18 = arith.constant 0 : index
      %c0_19 = arith.constant 0 : index
      %c0_20 = arith.constant 0 : index
      %28 = vector.load %arg6[%c0_18, %c0_19, %c0_20] : memref<1x8x128xf32, #tpu.memory_space<vmem>>, vector<1x8x128xf32>
      tpu.vector_store %arg6[%c0_18, %c0_19, %c0_20], %27 {strides = array<i32>} : memref<1x8x128xf32, #tpu.memory_space<vmem>>, vector<1x8x128xf32>,
    } else {
    }
    %c0 = arith.constant 0 : index
    %c0_1 = arith.constant 0 : index
    %3 = vector.load %arg2[%c0, %c0_1] : memref<16x128xf32, #tpu.memory_space<vmem>>, vector<16x128xf32>
    %c0_2 = arith.constant 0 : index
    %c0_3 = arith.constant 0 : index
    %4 = vector.load %arg3[%c0_2, %c0_3] : memref<16x128xf32, #tpu.memory_space<vmem>>, vector<16x128xf32>
    %cst = arith.constant -1.000000e+00 : f32
    %5 = vector.broadcast %cst : f32 to vector<16x128xf32>
    %6 = arith.cmpf oeq, %4, %5 : vector<16x128xf32>
    %cst_4 = arith.constant -1.000000e+00 : f32
    %7 = vector.broadcast %cst_4 : f32 to vector<16x128xf32>
    %8 = arith.select %6, %7, %3 : vector<16x128xi1>, vector<16x128xf32>
    %9 = arith.subf %8, %4 : vector<16x128xf32>
    %10 = math.absf %9 : vector<16x128xf32>
    %c0_5 = arith.constant 0 : index
    %c0_6 = arith.constant 0 : index
    %11 = vector.load %arg5[%c0_5, %c0_6] : memref<16x128xf32, #tpu.memory_space<vmem>>, vector<16x128xf32>
    %12 = math.absf %11 : vector<16x128xf32>
    %c0_7 = arith.constant 0 : index
    %c0_8 = arith.constant 0 : index
    %13 = vector.load %arg4[%c0_7, %c0_8] : memref<16x128xf32, #tpu.memory_space<vmem>>, vector<16x128xf32>
    %14 = math.absf %13 : vector<16x128xf32>
    %cst_9 = arith.constant 2.000000e+00 : f32
    %15 = vector.broadcast %cst_9 : f32 to vector<16x128xf32>
    %16 = arith.mulf %15, %14 : vector<16x128xf32>
    %17 = arith.addf %12, %16 : vector<16x128xf32>
    %18 = arith.mulf %17, %10 : vector<16x128xf32>
    %c0_10 = arith.constant 0 : index
    %c0_11 = arith.constant 0 : index
    %c0_12 = arith.constant 0 : index
    %19 = vector.load %arg6[%c0_10, %c0_11, %c0_12] : memref<1x8x128xf32, #tpu.memory_space<vmem>>, vector<1x8x128xf32>
    %20 = vector.shape_cast %19 : vector<1x8x128xf32> to vector<8x128xf32>
    %21 = vector.shape_cast %18 : vector<16x128xf32> to vector<2x8x128xf32>
    %cst_13 = arith.constant dense<0.000000e+00> : vector<8x128xf32>
    %22 = vector.multi_reduction <add>, %21, %cst_13 [0] : vector<2x8x128xf32> to vector<8x128xf32>
    %23 = arith.addf %20, %22 : vector<8x128xf32>
    %c0_14 = arith.constant 0 : index
    %c0_15 = arith.constant 0 : index
    %c0_16 = arith.constant 0 : index
    %24 = vector.load %arg6[%c0_14, %c0_15, %c0_16] : memref<1x8x128xf32, #tpu.memory_space<vmem>>, vector<1x8x128xf32>
    %25 = vector.shape_cast %24 : vector<1x8x128xf32> to vector<8x128xf32>
    %26 = vector.shape_cast %23 : vector<8x128xf32> to vector<1x8x128xf32>
    tpu.vector_store %arg6[%c0_14, %c0_15, %c0_16], %26 {strides = array<i32>} : memref<1x8x128xf32, #tpu.memory_space<vmem>>, vector<1x8x128xf32>,
    return
  }
  func.func @transform_0(%arg0: i32, %arg1: i32) -> (i32, i32) {
    %c1_i32 = arith.constant 1 : i32
    %0 = arith.muli %arg0, %c1_i32 : i32
    %1 = arith.addi %0, %arg1 : i32
    %c0_i32 = arith.constant 0 : i32
    %2 = arith.minsi %1, %c0_i32 : i32
    %c0_i32_0 = arith.constant 0 : i32
    %c0_i32_1 = arith.constant 0 : i32
    return %2, %c0_i32_0 : i32, i32
  }
  func.func @transform_1(%arg0: i32, %arg1: i32) -> (i32, i32) {
    %c1_i32 = arith.constant 1 : i32
    %0 = arith.muli %arg0, %c1_i32 : i32
    %1 = arith.addi %0, %arg1 : i32
    %c0_i32 = arith.constant 0 : i32
    %2 = arith.minsi %1, %c0_i32 : i32
    %c0_i32_0 = arith.constant 0 : i32
    %c0_i32_1 = arith.constant 0 : i32
    return %2, %c0_i32_0 : i32, i32
  }
  func.func @transform_2(%arg0: i32, %arg1: i32) -> (i32, i32) {
    %c1_i32 = arith.constant 1 : i32
    %0 = arith.muli %arg0, %c1_i32 : i32
    %1 = arith.addi %0, %arg1 : i32
    %c0_i32 = arith.constant 0 : i32
    %2 = arith.minsi %1, %c0_i32 : i32
    %c0_i32_0 = arith.constant 0 : i32
    %c0_i32_1 = arith.constant 0 : i32
    return %2, %c0_i32_0 : i32, i32
  }
  func.func @transform_3(%arg0: i32, %arg1: i32) -> (i32, i32) {
    %c1_i32 = arith.constant 1 : i32
    %0 = arith.muli %arg0, %c1_i32 : i32
    %1 = arith.addi %0, %arg1 : i32
    %c0_i32 = arith.constant 0 : i32
    %2 = arith.minsi %1, %c0_i32 : i32
    %c0_i32_0 = arith.constant 0 : i32
    %c0_i32_1 = arith.constant 0 : i32
    return %2, %c0_i32_0 : i32, i32
  }
  func.func @transform_4(%arg0: i32, %arg1: i32) -> (i32, i32, i32) {
    %c0_i32 = arith.constant 0 : i32
    %c0_i32_0 = arith.constant 0 : i32
    %c0_i32_1 = arith.constant 0 : i32
    return %arg0, %c0_i32, %c0_i32_0 : i32, i32, i32
  }
}

</mosaic_0001>

<bundles_post_ra>
// kernel: loss_range_pallas.1
= control target key start
LH: loop header
LB: loop body
LE: loop exit
PB: predicated region body
PF: predicated region fallthrough
CT: control target
= control target key end

     0   :  { %s261_s0 = inlined_call_operand.vmem [shape: f32[16,128], index: 0, kind: input, shape index: {}]   ;;  %s262_s1 = inlined_call_operand.vmem [shape: f32[16,128], index: 1, kind: input, shape index: {}]   ;;  %s263_s3 = inlined_call_operand.vmem [shape: f32[16,128], index: 3, kind: input, shape index: {}]   ;;  %s264_s2 = inlined_call_operand.vmem [shape: f32[16,128], index: 2, kind: input, shape index: {}]   ;;  %s265_s4 = inlined_call_operand.vmem [shape: f32[1,8,128], index: 4, kind: output, shape index: {}]  }
   0x1   :  { %v150_v0 = vld [vmem:[%s261_s0] sm:$0xff]  ;;  %v151_v1 = vld [vmem:[%s261_s0 + $0x8] sm:$0xff] }
   0x2   :  { %v152_v2 = vld [vmem:[%s262_s1] sm:$0xff]  ;;  %v153_v3 = vld [vmem:[%s262_s1 + $0x8] sm:$0xff] }
   0x3   :  { %vm154_vm0 = vcmp.eq.f32.partialorder %v152_v2, -1.0  ;;  %v162_v4 = vld [vmem:[%s263_s3] sm:$0xff]  ;;  %v163_v5 = vld [vmem:[%s263_s3 + $0x8] sm:$0xff]  ;;  %vm155_vm1 = vcmp.eq.f32.partialorder %v153_v3, -1.0 }
   0x4   :  { %v156_v6 = vsel %vm154_vm0, -1.0, %v150_v0  ;;  %v157_v7 = vsel %vm155_vm1, -1.0, %v151_v1  ;;  %v164_v9 = vand.u32 2147483647, %v162_v4  ;;  %v166_v10 = vld [vmem:[%s264_s2] sm:$0xff]  ;;  %v167_v11 = vld [vmem:[%s264_s2 + $0x8] sm:$0xff] }
   0x5   :  { %v158_v8 = vsub.f32 %v156_v6, %v152_v2  ;;  %v159_v12 = vsub.f32 %v157_v7, %v153_v3  ;;  %v165_v13 = vand.u32 2147483647, %v163_v5  ;;  %v168_v14 = vand.u32 2147483647, %v166_v10 }
   0x6   :  { %v169_v15 = vand.u32 2147483647, %v167_v11 }
   0x7   :  { %v160_v16 = vand.u32 2147483647, %v158_v8  ;;  %v161_v17 = vand.u32 2147483647, %v159_v12  ;;  %v170_v18 = vmul.f32 2.0, %v168_v14 }
   0x8   :  { %v171_v19 = vmul.f32 2.0, %v169_v15 }
   0x9   :  { %v172_v20 = vadd.f32 %v170_v18, %v164_v9 }
   0xa   :  { %v173_v21 = vadd.f32 %v171_v19, %v165_v13 }
   0xb   :  { %v174_v22 = vmul.f32 %v172_v20, %v160_v16 }
   0xc   :  { %v175_v23 = vmul.f32 %v173_v21, %v161_v17 }
   0xe   :  { %v177_v24 = vadd.f32 %v175_v23, %v174_v22 }
  0x10   :  { %179 = vst [vmem:[%s265_s4] sm:$0xff] %v177_v24 }

</bundles_post_ra>
